<compile_context>
chip_gen: v6e
topology: v6e:2x2x1
jax: 0.10.0
libtpu: 0.0.40
codegen_flags: <defaults>
</compile_context>

<pallas_src>
import functools

import jax
import jax.numpy as jnp
from jax.experimental import pallas as pl
from jax.experimental.pallas import tpu as pltpu

K = 5            # conv kernel size
C_IN = 4         # input channels of the module
C_USED = 3       # channels that carry the (identical) Sobel filter
HALO = K - 1     # 4
HDR = 8          # sublane-aligned header rows in the carry scratch

# Separable taps: x_filter[i, j] = A[i] * B[j], y_filter[i, j] = B[i] * A[j]
A_TAPS = (-1.0, -2.0, 0.0, 2.0, 1.0)
B_TAPS = (1.0, 4.0, 6.0, 4.0, 1.0)


def _sobel_kernel(x_ref, o_ref, xe_ref, *, th, w, wout, lane_roll):
    """One (batch, row-tile) step.

    x_ref : (1, 3, th, w)   input rows [r*th, (r+1)*th) of channels 0..2
    o_ref : (1, 1, th, w)   padded output rows [r*th, (r+1)*th)
                            (padded row p  <->  true output row p - 4)
    xe_ref: (th + 8, w)     persistent scratch:
                              rows [4:8)     = carry (last 4 rows of prev tile)
                              rows [8:th+8)  = current tile (channel-summed)
    """
    # 1) Carry: last 4 rows of the previous tile -> header.  At the first row
    #    tile of an image this is garbage; it only feeds the 4 padded output
    #    rows that the wrapper slices off.
    xe_ref[4:8, :] = xe_ref[th + 4:th + 8, :]

    # 2) Channel collapse: the three used channels share one filter.
    xe_ref[8:th + 8, :] = x_ref[0, 0] + x_ref[0, 1] + x_ref[0, 2]

    # 3) Vertical (sublane) pass of the separable filters.
    s0 = xe_ref[4:4 + th, :]
    s1 = xe_ref[5:5 + th, :]
    s2 = xe_ref[6:6 + th, :]
    s3 = xe_ref[7:7 + th, :]
    s4 = xe_ref[8:8 + th, :]
    # a = [-1,-2,0,2,1], b = [1,4,6,4,1]; paired sums give the VALU some ILP.
    va = (s4 - s0) + 2.0 * (s3 - s1)                     # vertical with a
    vb = (s0 + s4) + 4.0 * (s1 + s3) + 6.0 * s2          # vertical with b

    # 4) Horizontal (lane) pass + fused magnitude epilogue.
    if lane_roll:
        # W % 128 == 0: lane shifts on the XLU, full-width (lane-dense) store.
        def sh(v, j):
            return v if j == 0 else pltpu.roll(v, shift=w - j, axis=1)
        gx = (sh(va, 0) + sh(va, 4)) + 4.0 * (sh(va, 1) + sh(va, 3)) + 6.0 * sh(va, 2)
        gy = (sh(vb, 4) - sh(vb, 0)) + 2.0 * (sh(vb, 3) - sh(vb, 1))
        o_ref[0, 0, :, :] = jnp.sqrt(gx * gx + gy * gy)
    else:
        # Unaligned W: fall back to static width-wout slices (always lowers).
        def sh(v, j):
            return v[:, j:j + wout]
        gx = (sh(va, 0) + sh(va, 4)) + 4.0 * (sh(va, 1) + sh(va, 3)) + 6.0 * sh(va, 2)
        gy = (sh(vb, 4) - sh(vb, 0)) + 2.0 * (sh(vb, 3) - sh(vb, 1))
        o_ref[0, 0, :, 0:wout] = jnp.sqrt(gx * gx + gy * gy)


def _auto_row_tile(h, w):
    """Pick a row-tile size and VMEM limit from the TPU generation."""
    kind = ""
    try:
        kind = jax.devices()[0].device_kind.lower()
    except Exception:  # pragma: no cover - CPU/interpret fallbacks
        pass
    if "v7" in kind:              # 64 MiB VMEM per TensorCore
        budget, vmem_limit = 20 * 2**20, 40 * 2**20
    else:                         # v5e / v6e: 128 MiB VMEM
        budget, vmem_limit = 40 * 2**20, 64 * 2**20
    # ~64 B per (row, col): 2x double-buffered 3-ch input + 2x output +
    # carry scratch + a few f32 temporaries.
    max_rows = max(8, budget // (64 * w))
    if h <= max_rows:
        return h, vmem_limit                 # whole image per grid step
    return max(8, min(1024, (max_rows // 8) * 8)), vmem_limit


def sobel_filtering(x, *, row_tile=None):
    """x: (N, 4, H, W) float32 -> (N, 1, H-4, W-4) float32."""
    n, c, h, w = x.shape
    assert c == C_IN and h >= K and w >= K
    hout, wout = h - HALO, w - HALO

    if row_tile is None:
        th, vmem_limit = _auto_row_tile(h, w)
    else:
        th, vmem_limit = min(max(int(row_tile), 8), h), 64 * 2**20

    n_tiles = pl.cdiv(h, th)
    hpad = n_tiles * th                      # padded output height (>= hout+4)
    lane_roll = (w % 128 == 0)

    kernel = functools.partial(
        _sobel_kernel, th=th, w=w, wout=wout, lane_roll=lane_roll)

    out_pad = pl.pallas_call(
        kernel,
        out_shape=jax.ShapeDtypeStruct((n, 1, hpad, w), jnp.float32),
        grid_spec=pltpu.PrefetchScalarGridSpec(
            num_scalar_prefetch=0,
            grid=(n, n_tiles),
            # Channel block of 3 -> the all-zero channel 3 is never DMA'd.
            in_specs=[pl.BlockSpec((1, C_USED, th, w), lambda b, r: (b, 0, r, 0))],
            out_specs=pl.BlockSpec((1, 1, th, w), lambda b, r: (b, 0, r, 0)),
            scratch_shapes=[pltpu.VMEM((th + HDR, w), jnp.float32)],
        ),
        compiler_params=pltpu.CompilerParams(
            # batch parallel (megacore); row axis sequential (carry dependence)
            dimension_semantics=("parallel", "arbitrary"),
            vmem_limit_bytes=vmem_limit),
    )(x)

    # Padded row p corresponds to true output row p - 4; drop the 4 pad rows
    # at the top, any bottom padding, and the 4 pad columns (lane-dense store
    # in the kernel, single trim slice here).
    return out_pad[:, :, HALO:HALO + hout, :wout]


def _reference(x):
    """Pure-JAX reference: direct 5x5 cross-correlation, PyTorch semantics."""
    n, c, h, w = x.shape
    hout, wout = h - HALO, w - HALO
    a = jnp.array(A_TAPS, jnp.float32)
    b = jnp.array(B_TAPS, jnp.float32)
    wx = a[:, None] * b[None, :]          # x_filter
    wy = b[:, None] * a[None, :]          # y_filter
    xs = x[:, 0] + x[:, 1] + x[:, 2]      # channel 3 weight is zero
    gx = jnp.zeros((n, hout, wout), jnp.float32)
    gy = jnp.zeros((n, hout, wout), jnp.float32)
    for i in range(K):
        for j in range(K):
            win = xs[:, i:i + hout, j:j + wout]
            gx = gx + wx[i, j] * win
            gy = gy + wy[i, j] * win
    return jnp.sqrt(gx * gx + gy * gy)[:, None, :, :]


if __name__ == "__main__":
    key = jax.random.PRNGKey(0)

    # 1) Module-sized test (single row tile per image).
    x = jax.random.normal(key, (2, 4, 16, 16), dtype=jnp.float32)
    out = jax.block_until_ready(sobel_filtering(x))
    ref = jax.block_until_ready(_reference(x))
    assert out.shape == (2, 1, 12, 12), out.shape
    assert jnp.allclose(out, ref, atol=1e-3, rtol=1e-4), "mismatch vs reference"

    # 2) Multi-row-tile test: exercises the carry between row tiles and the
    #    partial last input tile (H not a multiple of the row tile).
    x2 = jax.random.normal(jax.random.PRNGKey(1), (1, 4, 40, 16), dtype=jnp.float32)
    out2 = jax.block_until_ready(sobel_filtering(x2, row_tile=16))
    ref2 = jax.block_until_ready(_reference(x2))
    assert out2.shape == (1, 1, 36, 12), out2.shape
    assert jnp.allclose(out2, ref2, atol=1e-3, rtol=1e-4), "tiled mismatch vs reference"

    print("KERNEL_OK")
</pallas_src>

<mosaic_0001>
module attributes {stable_mosaic.version = 11 : i64} {
  func.func @_sobel_kernel(%arg0: i32, %arg1: i32, %arg2: memref<1x3x16x16xf32, #tpu.memory_space<vmem>>, %arg3: memref<1x1x16x16xf32, #tpu.memory_space<vmem>>, %arg4: memref<24x16xf32, #tpu.memory_space<vmem>>) attributes {dimension_semantics = [#tpu.dimension_semantics<parallel>, #tpu.dimension_semantics<arbitrary>], iteration_bounds = array<i64: 2, 1>, scalar_prefetch = 0 : i64, scratch_operands = 1 : i64, tpu.core_type = #tpu.core_type<tc>, window_params = [{transform_indices = @transform_0, window_bounds = array<i64: 1, 3, 16, 16>}, {transform_indices = @transform_1, window_bounds = array<i64: 1, 1, 16, 16>}]} {
    %c20 = arith.constant 20 : index
    %c0 = arith.constant 0 : index
    %0 = vector.load %arg4[%c20, %c0] : memref<24x16xf32, #tpu.memory_space<vmem>>, vector<4x16xf32>
    %c4 = arith.constant 4 : index
    %c0_0 = arith.constant 0 : index
    %1 = vector.load %arg4[%c4, %c0_0] : memref<24x16xf32, #tpu.memory_space<vmem>>, vector<4x16xf32>
    tpu.vector_store %arg4[%c4, %c0_0], %0 {strides = array<i32>} : memref<24x16xf32, #tpu.memory_space<vmem>>, vector<4x16xf32>,
    %c0_1 = arith.constant 0 : index
    %c0_2 = arith.constant 0 : index
    %c0_3 = arith.constant 0 : index
    %c0_4 = arith.constant 0 : index
    %2 = vector.load %arg2[%c0_1, %c0_2, %c0_3, %c0_4] : memref<1x3x16x16xf32, #tpu.memory_space<vmem>>, vector<1x1x16x16xf32>
    %3 = vector.shape_cast %2 : vector<1x1x16x16xf32> to vector<16x16xf32>
    %c0_5 = arith.constant 0 : index
    %c1 = arith.constant 1 : index
    %c0_6 = arith.constant 0 : index
    %c0_7 = arith.constant 0 : index
    %4 = vector.load %arg2[%c0_5, %c1, %c0_6, %c0_7] : memref<1x3x16x16xf32, #tpu.memory_space<vmem>>, vector<1x1x16x16xf32>
    %5 = vector.shape_cast %4 : vector<1x1x16x16xf32> to vector<16x16xf32>
    %6 = arith.addf %3, %5 : vector<16x16xf32>
    %c0_8 = arith.constant 0 : index
    %c2 = arith.constant 2 : index
    %c0_9 = arith.constant 0 : index
    %c0_10 = arith.constant 0 : index
    %7 = vector.load %arg2[%c0_8, %c2, %c0_9, %c0_10] : memref<1x3x16x16xf32, #tpu.memory_space<vmem>>, vector<1x1x16x16xf32>
    %8 = vector.shape_cast %7 : vector<1x1x16x16xf32> to vector<16x16xf32>
    %9 = arith.addf %6, %8 : vector<16x16xf32>
    %c8 = arith.constant 8 : index
    %c0_11 = arith.constant 0 : index
    %10 = vector.load %arg4[%c8, %c0_11] : memref<24x16xf32, #tpu.memory_space<vmem>>, vector<16x16xf32>
    tpu.vector_store %arg4[%c8, %c0_11], %9 {strides = array<i32>} : memref<24x16xf32, #tpu.memory_space<vmem>>, vector<16x16xf32>,
    %c4_12 = arith.constant 4 : index
    %c0_13 = arith.constant 0 : index
    %11 = vector.load %arg4[%c4_12, %c0_13] : memref<24x16xf32, #tpu.memory_space<vmem>>, vector<16x16xf32>
    %c5 = arith.constant 5 : index
    %c0_14 = arith.constant 0 : index
    %12 = vector.load %arg4[%c5, %c0_14] : memref<24x16xf32, #tpu.memory_space<vmem>>, vector<16x16xf32>
    %c6 = arith.constant 6 : index
    %c0_15 = arith.constant 0 : index
    %13 = vector.load %arg4[%c6, %c0_15] : memref<24x16xf32, #tpu.memory_space<vmem>>, vector<16x16xf32>
    %c7 = arith.constant 7 : index
    %c0_16 = arith.constant 0 : index
    %14 = vector.load %arg4[%c7, %c0_16] : memref<24x16xf32, #tpu.memory_space<vmem>>, vector<16x16xf32>
    %c8_17 = arith.constant 8 : index
    %c0_18 = arith.constant 0 : index
    %15 = vector.load %arg4[%c8_17, %c0_18] : memref<24x16xf32, #tpu.memory_space<vmem>>, vector<16x16xf32>
    %16 = arith.subf %15, %11 : vector<16x16xf32>
    %17 = arith.subf %14, %12 : vector<16x16xf32>
    %cst = arith.constant 2.000000e+00 : f32
    %18 = vector.broadcast %cst : f32 to vector<16x16xf32>
    %19 = arith.mulf %18, %17 : vector<16x16xf32>
    %20 = arith.addf %16, %19 : vector<16x16xf32>
    %21 = arith.addf %11, %15 : vector<16x16xf32>
    %22 = arith.addf %12, %14 : vector<16x16xf32>
    %cst_19 = arith.constant 4.000000e+00 : f32
    %23 = vector.broadcast %cst_19 : f32 to vector<16x16xf32>
    %24 = arith.mulf %23, %22 : vector<16x16xf32>
    %25 = arith.addf %21, %24 : vector<16x16xf32>
    %cst_20 = arith.constant 6.000000e+00 : f32
    %26 = vector.broadcast %cst_20 : f32 to vector<16x16xf32>
    %27 = arith.mulf %26, %13 : vector<16x16xf32>
    %28 = arith.addf %25, %27 : vector<16x16xf32>
    %29 = vector.extract_strided_slice %20 {offsets = [0, 0], sizes = [16, 12], strides = [1, 1]} : vector<16x16xf32> to vector<16x12xf32>
    %30 = vector.extract_strided_slice %20 {offsets = [0, 4], sizes = [16, 12], strides = [1, 1]} : vector<16x16xf32> to vector<16x12xf32>
    %31 = arith.addf %29, %30 : vector<16x12xf32>
    %32 = vector.extract_strided_slice %20 {offsets = [0, 1], sizes = [16, 12], strides = [1, 1]} : vector<16x16xf32> to vector<16x12xf32>
    %33 = vector.extract_strided_slice %20 {offsets = [0, 3], sizes = [16, 12], strides = [1, 1]} : vector<16x16xf32> to vector<16x12xf32>
    %34 = arith.addf %32, %33 : vector<16x12xf32>
    %cst_21 = arith.constant 4.000000e+00 : f32
    %35 = vector.broadcast %cst_21 : f32 to vector<16x12xf32>
    %36 = arith.mulf %35, %34 : vector<16x12xf32>
    %37 = arith.addf %31, %36 : vector<16x12xf32>
    %38 = vector.extract_strided_slice %20 {offsets = [0, 2], sizes = [16, 12], strides = [1, 1]} : vector<16x16xf32> to vector<16x12xf32>
    %cst_22 = arith.constant 6.000000e+00 : f32
    %39 = vector.broadcast %cst_22 : f32 to vector<16x12xf32>
    %40 = arith.mulf %39, %38 : vector<16x12xf32>
    %41 = arith.addf %37, %40 : vector<16x12xf32>
    %42 = vector.extract_strided_slice %28 {offsets = [0, 4], sizes = [16, 12], strides = [1, 1]} : vector<16x16xf32> to vector<16x12xf32>
    %43 = vector.extract_strided_slice %28 {offsets = [0, 0], sizes = [16, 12], strides = [1, 1]} : vector<16x16xf32> to vector<16x12xf32>
    %44 = arith.subf %42, %43 : vector<16x12xf32>
    %45 = vector.extract_strided_slice %28 {offsets = [0, 3], sizes = [16, 12], strides = [1, 1]} : vector<16x16xf32> to vector<16x12xf32>
    %46 = vector.extract_strided_slice %28 {offsets = [0, 1], sizes = [16, 12], strides = [1, 1]} : vector<16x16xf32> to vector<16x12xf32>
    %47 = arith.subf %45, %46 : vector<16x12xf32>
    %cst_23 = arith.constant 2.000000e+00 : f32
    %48 = vector.broadcast %cst_23 : f32 to vector<16x12xf32>
    %49 = arith.mulf %48, %47 : vector<16x12xf32>
    %50 = arith.addf %44, %49 : vector<16x12xf32>
    %51 = arith.mulf %41, %41 : vector<16x12xf32>
    %52 = arith.mulf %50, %50 : vector<16x12xf32>
    %53 = arith.addf %51, %52 : vector<16x12xf32>
    %54 = math.sqrt %53 : vector<16x12xf32>
    %c0_24 = arith.constant 0 : index
    %c0_25 = arith.constant 0 : index
    %c0_26 = arith.constant 0 : index
    %c0_27 = arith.constant 0 : index
    %55 = vector.load %arg3[%c0_24, %c0_25, %c0_26, %c0_27] : memref<1x1x16x16xf32, #tpu.memory_space<vmem>>, vector<1x1x16x12xf32>
    %56 = vector.shape_cast %55 : vector<1x1x16x12xf32> to vector<16x12xf32>
    %57 = vector.shape_cast %54 : vector<16x12xf32> to vector<1x1x16x12xf32>
    tpu.vector_store %arg3[%c0_24, %c0_25, %c0_26, %c0_27], %57 {strides = array<i32>} : memref<1x1x16x16xf32, #tpu.memory_space<vmem>>, vector<1x1x16x12xf32>,
    return
  }
  func.func @transform_0(%arg0: i32, %arg1: i32) -> (i32, i32, i32, i32) {
    %c0_i32 = arith.constant 0 : i32
    %c0_i32_0 = arith.constant 0 : i32
    %c0_i32_1 = arith.constant 0 : i32
    return %arg0, %c0_i32, %arg1, %c0_i32_0 : i32, i32, i32, i32
  }
  func.func @transform_1(%arg0: i32, %arg1: i32) -> (i32, i32, i32, i32) {
    %c0_i32 = arith.constant 0 : i32
    %c0_i32_0 = arith.constant 0 : i32
    %c0_i32_1 = arith.constant 0 : i32
    return %arg0, %c0_i32, %arg1, %c0_i32_0 : i32, i32, i32, i32
  }
}

</mosaic_0001>

<bundles_post_ra>
// kernel: tpu_custom_call.1
= control target key start
LH: loop header
LB: loop body
LE: loop exit
PB: predicated region body
PF: predicated region fallthrough
CT: control target
= control target key end

     0   :  { %6 = vsyncpa [#allocation4], 0  ;;  %s791_s0 = inlined_call_operand.hbm [shape: f32[2,4,16,16], index: 0, kind: input, shape index: {}]   ;;  %s792_s1 = inlined_call_operand.hbm [shape: f32[2,1,16,16], index: 1, kind: output, shape index: {}]  }
   0x1   :  { %8 = vsyncpa [#allocation4 + $0x1], 0 }
   0x2   :  { %9 = vsyncpa [#allocation5], 0 }
   0x3   :  { %11 = vsyncpa [#allocation5 + $0x1], 0  ;;  %s638_s6 = smov 0   ;;  %s640_s7 = smov 0  }
   0x4   :  { %s642_s8 = smov 0   ;;  %s644_s9 = smov 0  }
   0x5   :  { %s646_s10 = smov 0   ;;  %s648_s11 = smov 0  }
   0x6 LB: > { %s409_s12 = sadd.s32 4294967295, %s614_s11   ;;  %s410_s13 = sadd.s32 4294967294, %s614_s11   ;;  %s614_s11 = sphi %s648_s11, %s17_s11   ;;  %s610_s10 = sphi %s646_s10, %s803_s10   ;;  %s606_s9 = sphi %s644_s9, %s802_s9   ;;  %s602_s8 = sphi %s642_s8, %s801_s8   ;;  %s598_s7 = sphi %s640_s7, %s800_s7   ;;  %s594_s6 = sphi %s638_s6, %s799_s6  }
   0x7   : > { %s29_s14 = sadd.s32 1, %s610_s10  ;;  %s38_s15 = sadd.s32 1, %s602_s8 }
   0x8   : > { %p31_p0 = scmp.ge.s32.totalorder %s29_s14, 2  ;;  %p45_p1 = scmp.ne.s32.totalorder %s602_s8, %s598_s7 }
   0x9   : > { %p46_p2 = scmp.eq.s32.totalorder %s614_s11, 0  ;;  %p51_p3 = scmp.ne.s32.totalorder %s598_s7, %s594_s6 }
   0xa   : > { %s805_s14 = smov (%p31_p0, %s29_s14), 0  ;;  %p52_p5 = scmp.eq.s32.totalorder %s409_s12, 0 }
   0xb   : > { %p679_p4 = por %p46_p2, %p45_p1  ;;  %s33_s17 = ssub.s32 %s610_s10, %s805_s14 }
   0xc   : > { %p77_p6 = scmp.eq.s32.totalorder %s409_s12, 1  ;;  %p36_p7 = scmp.eq.s32.totalorder %s33_s17, 0 }
   0xd   : > { %p685_p8 = por %p52_p5, %p51_p3  ;;  %p83_p10 = scmp.eq.s32.totalorder %s410_s13, 1 }
   0xe   : > { %p689_p9 = por %p77_p6, %p45_p1  ;;  %p442_p13 = scmp.lt.s32.totalorder %s614_s11, 2 }
   0xf   : > { %s694_s20 = scalar_select %p36_p7, %s602_s8, %s38_s15  }
  0x10   : > { %p696_p11 = por %p83_p10, %p51_p3  ;;  %s103_s22 = sand.u32 1, %s602_s8  }
  0x11   : > { %s428_s23 = smul.u32 48, %s103_s22  ;;  %s426_s24 = sshll.u32 %s610_s10, 10 }
  0x12   : > { %p706_p0 = pnand %p442_p13, %p679_p4  ;;  %s115_s28 = scalar_lea.hbm %s791_s0, %s426_s24 }
  0x13   : > { %s107_s29 = scalar_lea.vmem [#allocation3], %s428_s23  ;;  %p415_p1 = scmp.ge.s32.totalorder %s614_s11, 1 }
  0x14   : > { %s116_s30 = sshll.u32 %s107_s29, 4  ;;  %s104_s2 = scalar_lea.sflag [#allocation4], %s103_s22  ;;  %s117_s30 = int_to_ptr.vmem [resolvable:$true] %s116_s30 }
  0x15   : > { %p508_p2 = pneg %p706_p0  ;;  %s519_s3 = scalar_lea.vmem %s117_s30, 768 }
  0x16   : > { %p520_p3 = scmp.ne.s32.totalorder %s117_s30, %s519_s3  ;;  %s616_s4 = smov [#allocation3]  }
  0x17   : > { %s524_s5 = sshll.u32 %s616_s4, 4  ;;  %s525_s5 = int_to_ptr.vmem [resolvable:$false] %s524_s5 }
  0x18   : > { %p522_p5 = pnand %p520_p3, %p508_p2  ;;  %s526_s12 = scalar_lea.vmem %s525_s5, 1536 }
  0x19   : > { %p527_p4 = scmp.lt.s32.totalorder %s117_s30, %s525_s5  ;;  %p528_p7 = scmp.lt.s32.totalorder %s526_s12, %s519_s3 }
  0x1a   : > { %p523_p6 = pneg %p522_p5 }
  0x1b   : > { %p529_p10 = por %p528_p7, %p527_p4 }
  0x1d   : > { %p530_p13 = pnand %p529_p10, %p523_p6 }
  0x1f   : > { %533 = shalt.err (!%p530_p13)
}
  0x20   : > { %s617_s13 = smov 128   ;;  %s618_s15 = smov 8  }
  0x21   : > { %437 = dma.hbm_to_vmem [thread:$0]  (!%p706_p0), %s115_s28, 768, %s117_s30, %s104_s2, %s617_s13, %s617_s13, %s618_s15  }
  0x22   : > { %p124_p12 = scmp.lt.s32.totalorder %s614_s11, 3 }
  0x24   : > { %p125_p2 = pnand %p415_p1, %p124_p12 }
  0x25   : > { %s722_s16 = sand.u32 (!%p125_p2), 1, %s598_s7  }
  0x26   : > { %128 = sbr.rel (%p125_p2) target bundleno = 460 (0x1cc), region = 24  ;;  %s131_s22 = scalar_lea.sflag (!%p125_p2), [#allocation4], %s722_s16 }
  0x27   : > { %s429_s17 = smul.u32 (!%p125_p2), 48, %s722_s16 }
  0x29   : > { %s134_s23 = scalar_lea.vmem (!%p125_p2), [#allocation3], %s429_s17 }
  0x2b   : > { %585 = dma.done.wait (%p685_p8), %s131_s22, 768  }
  0x2c   : > { %587 = vsyncadd (%p685_p8), %s131_s22, 4294966528  ;;  %vm156_vm0 = vcmask 125952   ;;  %v155_v0 = vld [vmem:[#allocation2 + $0x14] sm:$0xf]  ;;  %v158_v1 = vld [vmem:[%s134_s23] sm:$0xff]  ;;  %vm170_vm1 = vcmask 130048  }
  0x2d   : > { %v417_v2 = vld [vmem:[%s134_s23 + $0x10] sm:$0xff]  ;;  %157 = vst.msk [vmem:[#allocation2 + $0x4] sm:$0xf] %vm156_vm0, %v155_v0  ;;  %v419_v4 = vld [vmem:[%s134_s23 + $0x20] sm:$0xff]  ;;  %v159_v5 = vld [vmem:[%s134_s23 + $0x8] sm:$0xff]  ;;  %s619_s18 = smov 126  }
  0x2e   : > { %v163_v3 = vadd.f32 %v417_v2, %v158_v1  ;;  %v418_v6 = vld [vmem:[%s134_s23 + $0x18] sm:$0xff]  ;;  %v420_v8 = vld [vmem:[%s134_s23 + $0x28] sm:$0xff]  ;;  %s620_s24 = smov 2   ;;  %s621_s25 = smov 4   ;;  %vm303_vm3 = vcmask 97280  }
  0x2f   : > { %v164_v7 = vadd.f32 %v418_v6, %v159_v5  ;;  %s622_s26 = smov 1   ;;  %s623_s27 = smov 124  }
  0x30   : > { %v168_v9 = vadd.f32 %v419_v4, %v163_v3  ;;  %s624_s28 = smov 127   ;;  %s416_s29 = sshll.u32 %s722_s16, 4 }
  0x31   : > { %v169_v10 = vadd.f32 %v420_v8, %v164_v7  ;;  %s427_s30 = sshll.u32 %s606_s9, 8  ;;  %s152_s2 = scalar_lea.vmem [#allocation6], %s416_s29 }
  0x32   : > { %171 = vst.msk [vmem:[#allocation2 + $0x8] sm:$0xff] %vm170_vm1, %v168_v9  ;;  %s322_s3 = sshll.u32 %s152_s2, 4  ;;  %s740_s12 = scalar_lea.hbm %s792_s1, %s427_s30  ;;  %s742_s3 = int_to_ptr.vmem [resolvable:$true] %s322_s3 }
  0x33   : > { %172 = vst.msk [vmem:[#allocation2 + $0x10] sm:$0xff] %vm170_vm1, %v169_v10  ;;  %s307_s9 = scalar_lea.sflag [#allocation5], %s722_s16  ;;  %s534_s13 = scalar_lea.vmem %s742_s3, 256 }
  0x34   : > { %p535_p8 = scmp.ne.s32.totalorder %s742_s3, %s534_s13  ;;  %s625_s15 = smov [#allocation6]  }
  0x35   : > { %s538_s17 = sshll.u32 %s625_s15, 4  ;;  %s539_s17 = int_to_ptr.vmem [resolvable:$false] %s538_s17 }
  0x36   : > { %p536_p12 = pnand %p535_p8, %p689_p9  ;;  %s540_s22 = scalar_lea.vmem %s539_s17, 512 }
  0x37   : > { %p541_p1 = scmp.lt.s32.totalorder %s742_s3, %s539_s17  ;;  %p542_p3 = scmp.lt.s32.totalorder %s540_s22, %s534_s13 }
  0x38   : > { %p537_p0 = pneg %p536_p12 }
  0x39   : > { %v173_v11 = vld [vmem:[#allocation2 + $0x4] sm:$0xff]  ;;  %p543_p5 = por %p542_p3, %p541_p1 }
  0x3a   : > { %v175_v12 = vld [vmem:[#allocation2 + $0x5] sm:$0xff]  ;;  %v176_v21 = vld [vmem:[#allocation2 + $0xd] sm:$0xff] }
  0x3b   : > { %v177_v13 = vld [vmem:[#allocation2 + $0x6] sm:$0xff]  ;;  %v180_v22 = vld [vmem:[#allocation2 + $0xf] sm:$0xff]  ;;  %p544_p6 = pnand %p543_p5, %p537_p0 }
  0x3c   : > { %v179_v14 = vld [vmem:[#allocation2 + $0x7] sm:$0xff]  ;;  %v199_v23 = vmul.f32 6.0, %v177_v13  ;;  %v182_v25 = vld [vmem:[#allocation2 + $0x10] sm:$0xff]  ;;  %v186_v26 = vsub.f32 %v180_v22, %v176_v21  ;;  %v194_v27 = vadd.f32 %v180_v22, %v176_v21 }
  0x3d   : > { %v181_v15 = vld [vmem:[#allocation2 + $0x8] sm:$0xff]  ;;  %v185_v17 = vsub.f32 %v179_v14, %v175_v12  ;;  %v193_v19 = vadd.f32 %v179_v14, %v175_v12 }
  0x3e   : > { %v174_v16 = vld [vmem:[#allocation2 + $0xc] sm:$0xff]  ;;  %v191_v18 = vadd.f32 %v181_v15, %v173_v11  ;;  %v183_v20 = vsub.f32 %v181_v15, %v173_v11  ;;  %v196_v32 = vmul.f32 4.0, %v194_v27  ;;  %v188_v33 = vmul.f32 2.0, %v186_v26 }
  0x3f   : > { %v178_v24 = vld [vmem:[#allocation2 + $0xe] sm:$0xff]  ;;  %v195_v28 = vmul.f32 4.0, %v193_v19  ;;  %v184_v29 = vsub.f32 %v182_v25, %v174_v16  ;;  %v192_v30 = vadd.f32 %v182_v25, %v174_v16  ;;  %v187_v31 = vmul.f32 2.0, %v185_v17 }
  0x40   : > { %v200_v35 = vmul.f32 6.0, %v178_v24 }
  0x41   : > { %v197_v34 = vadd.f32 %v195_v28, %v191_v18  ;;  %v189_v36 = vadd.f32 %v187_v31, %v183_v20  ;;  %v198_v37 = vadd.f32 %v196_v32, %v192_v30  ;;  %v190_v39 = vadd.f32 %v188_v33, %v184_v29 }
  0x43   : > { %v201_v38 = vadd.f32 %v199_v23, %v197_v34  ;;  %213 = vrot.lane.b32.xlu1 %v189_v36, %s619_s18  ;;  %v202_v40 = vadd.f32 %v200_v35, %v198_v37  ;;  %v233_v53 = vmul.f32 6.0, %v189_v36  ;;  %v234_v54 = vmul.f32 6.0, %v190_v39 }
  0x45   : > { %255 = vrot.lane.b32.xlu0 %v201_v38, %s620_s24 }
  0x47   : > { %215 = vrot.lane.b32.xlu1 %v190_v39, %s619_s18 }
  0x49   : > { %257 = vrot.lane.b32.xlu0 %v202_v40, %s620_s24 }
  0x4b   : > { %249 = vrot.lane.b32.xlu1 %v202_v40, %s621_s25 }
  0x4d   : > { %247 = vrot.lane.b32.xlu0 %v201_v38, %s621_s25 }
  0xb5   : > { %v214_v42 = vpop.permute.xlu1 %213 }
  0xb6   : > { %v219_v47 = vadd.f32 %v214_v42, %v189_v36 }
  0xb7   : > { %v256_v41 = vpop.permute.xlu0 %255 }
  0xb8   : > { %v261_v43 = vsub.f32 %v201_v38, %v256_v41  ;;  %v221_v50 = vmul.f32 4.0, %v219_v47 }
  0xb9   : > { %v216_v48 = vpop.permute.xlu1 %215 }
  0xba   : > { %v263_v44 = vmul.f32 2.0, %v261_v43  ;;  %v220_v51 = vadd.f32 %v216_v48, %v190_v39 }
  0xbb   : > { %v258_v45 = vpop.permute.xlu0 %257 }
  0xbc   : > { %v262_v46 = vsub.f32 %v202_v40, %v258_v45  ;;  %267 = vrot.lane.b32.xlu0 %v263_v44, %s622_s26  ;;  %v222_v52 = vmul.f32 4.0, %v220_v51 }
  0xbd   : > { %v250_v57 = vpop.permute.xlu1 %249 }
  0xbe   : > { %v264_v49 = vmul.f32 2.0, %v262_v46  ;;  %v254_v61 = vsub.f32 %v202_v40, %v250_v57 }
  0xbf   : > { %v248_v55 = vpop.permute.xlu0 %247 }
  0xc0   : > { %269 = vrot.lane.b32.xlu1 %v264_v49, %s622_s26  ;;  %205 = vrot.lane.b32.xlu0 %v189_v36, %s623_s27  ;;  %v253_v56 = vsub.f32 %v201_v38, %v248_v55 }
  0xc4   : > { %207 = vrot.lane.b32.xlu1 %v190_v39, %s623_s27  ;;  %225 = vrot.lane.b32.xlu0 %v221_v50, %s624_s28 }
  0xc8   : > { %227 = vrot.lane.b32.xlu1 %v222_v52, %s624_s28  ;;  %237 = vrot.lane.b32.xlu0 %v233_v53, %s619_s18 }
  0xcc   : > { %239 = vrot.lane.b32.xlu1 %v234_v54, %s619_s18 }
 0x12e   : > { %v268_v58 = vpop.permute.xlu0 %267 }
 0x12f   : > { %v273_v59 = vadd.f32 %v268_v58, %v253_v56 }
 0x131   : > { %v277_v60 = vmul.f32 %v273_v59, %v273_v59 }
 0x132   : > { %v270_v62 = vpop.permute.xlu1 %269  ;;  %v206_v1 = vpop.permute.xlu0 %205 }
 0x133   : > { %v274_v63 = vadd.f32 %v270_v62, %v254_v61  ;;  %281 = vrot.lane.b32.xlu0 %v277_v60, %s623_s27  ;;  %v211_v4 = vadd.f32 %v206_v1, %v189_v36 }
 0x135   : > { %v278_v0 = vmul.f32 %v274_v63, %v274_v63 }
 0x136   : > { %v208_v2 = vpop.permute.xlu1 %207  ;;  %v226_v3 = vpop.permute.xlu0 %225 }
 0x137   : > { %283 = vrot.lane.b32.xlu1 %v278_v0, %s623_s27  ;;  %v212_v6 = vadd.f32 %v208_v2, %v190_v39  ;;  %v231_v7 = vadd.f32 %v226_v3, %v211_v4 }
 0x13a   : > { %v228_v5 = vpop.permute.xlu1 %227  ;;  %v238_v8 = vpop.permute.xlu0 %237 }
 0x13b   : > { %v232_v9 = vadd.f32 %v228_v5, %v212_v6  ;;  %v243_v10 = vadd.f32 %v238_v8, %v231_v7 }
 0x13d   : > { %v275_v12 = vmul.f32 %v243_v10, %v243_v10 }
 0x13e   : > { %v240_v11 = vpop.permute.xlu1 %239 }
 0x13f   : > { %v244_v13 = vadd.f32 %v240_v11, %v232_v9 }
 0x141   : > { %v276_v16 = vmul.f32 %v244_v13, %v244_v13 }
 0x1a5   : > { %v282_v14 = vpop.permute.xlu0 %281 }
 0x1a6   : > { %v287_v15 = vadd.f32 %v282_v14, %v275_v12 }
 0x1a8   : > { %502 = vrsqrt.f32 %v287_v15  ;;  %vm291_vm2 = vcmp.eq.f32.partialorder %v287_v15, inf  ;;  %v294_v21 = vand.u32 2147483648, %v287_v15  ;;  %vm293_vm4 = vcmp.eq.f32.partialorder %v287_v15, 0.0 }
 0x1a9   : > { %v284_v17 = vpop.permute.xlu1 %283 }
 0x1aa   : > { %v288_v18 = vadd.f32 %v284_v17, %v276_v16 }
 0x1ac   : > { %504 = vrsqrt.f32 %v288_v18  ;;  %vm298_vm5 = vcmp.eq.f32.partialorder %v288_v18, inf  ;;  %v301_v26 = vand.u32 2147483648, %v288_v18  ;;  %vm300_vm6 = vcmp.eq.f32.partialorder %v288_v18, 0.0 }
 0x1b5   : > { %v503_v19 = vpop.eup %502 }
 0x1b6   : > { %v290_v20 = vmul.f32 %v503_v19, %v287_v15 }
 0x1b8   : > { %v292_v22 = vsel %vm291_vm2, %v287_v15, %v290_v20 }
 0x1b9   : > { %v505_v23 = vpop.eup %504  ;;  %v295_v24 = vsel %vm293_vm4, %v294_v21, %v292_v22 }
 0x1ba   : > { %v297_v25 = vmul.f32 %v505_v23, %v288_v18  ;;  %304 = vst.msk [vmem:[%s152_s2] sm:$0xff] %vm303_vm3, %v295_v24 }
 0x1bc   : > { %v299_v27 = vsel %vm298_vm5, %v288_v18, %v297_v25 }
 0x1bd   : > { %v302_v28 = vsel %vm300_vm6, %v301_v26, %v299_v27 }
 0x1be   : > { %305 = vst.msk [vmem:[%s152_s2 + $0x8] sm:$0xff] %vm303_vm3, %v302_v28 }
 0x1bf   : > { %547 = shalt.err (!%p544_p6)
}
 0x1c0   : > { %s548_s23 = scalar_lea.hbm %s740_s12, 256  ;;  %s552_s25 = scalar_lea.hbm %s792_s1, 512 }
 0x1c1   : > { %p549_p4 = scmp.ne.s32.totalorder %s740_s12, %s548_s23  ;;  %p553_p13 = scmp.lt.s32.totalorder %s740_s12, %s792_s1 }
 0x1c2   : > { %p554_p2 = scmp.lt.s32.totalorder %s552_s25, %s548_s23 }
 0x1c3   : > { %p550_p7 = pnand %p549_p4, %p689_p9 }
 0x1c4   : > { %p555_p8 = por %p554_p2, %p553_p13 }
 0x1c5   : > { %p551_p10 = pneg %p550_p7 }
 0x1c7   : > { %p556_p12 = pnand %p555_p8, %p551_p10 }
 0x1c9   : > { %559 = shalt.err (!%p556_p12)
}
 0x1ca   : > { %s626_s28 = smov 128   ;;  %s627_s29 = smov 8  }
 0x1cb   : > { %432 = dma.vmem_to_hbm [thread:$0]  (%p689_p9), %s742_s3, 256, %s740_s12, %s307_s9, %s626_s28, %s626_s28, %s627_s29  }
 0x1cc PF: > { %s337_s30 = sand.u32 1, %s594_s6   ;;  %p798_p0 = scmp.ge.s32.totalorder %s614_s11, 2 }
 0x1cd   : > { %s338_s2 = scalar_lea.sflag [#allocation5], %s337_s30 }
 0x1ce   : > { %p439_p1 = pnand %p798_p0, %p696_p11 }
 0x1d0   : > { %p440_p3 = pneg %p439_p1 }
 0x1d2   : > { %589 = dma.done.wait (%p440_p3), %s338_s2, 256  }
 0x1d3   : > { %591 = vsyncadd (%p440_p3), %s338_s2, 4294967040  ;;  %s17_s11 = sadd.s32 1, %s614_s11   ;;  %s799_s6 = smov %s598_s7 }
 0x1d4   : > { %p14_p5 = scmp.ge.s32.totalorder %s17_s11, 4   ;;  %s800_s7 = smov %s602_s8 }
 0x1d5   : > { %s801_s8 = smov %s694_s20  ;;  %s802_s9 = smov %s610_s10 }
 0x1d6   : > { %s803_s10 = smov %s805_s14  ;;  %16 = sbr.rel (!%p14_p5) target bundleno = 6 (0x6), region = 71 }
 0x1db   :  { %343 = vsyncpa [#allocation4], 1 }
 0x1dc   :  { %345 = vsyncpa [#allocation4 + $0x1], 1 }
 0x1dd   :  { %346 = vsyncpa [#allocation5], 1 }
 0x1de   :  { %348 = vsyncpa [#allocation5 + $0x1], 1 }

</bundles_post_ra>
